<compile_context>
chip_gen: v6e
topology: v6e:2x2x1
jax: 0.10.0
libtpu: 0.0.40
codegen_flags: <defaults>
</compile_context>

<pallas_src>
import math

import jax
import jax.numpy as jnp
from jax.experimental import pallas as pl
from jax.experimental.pallas import tpu as pltpu

_LANE = 128
_SUBLANE = 8
_MIN_GRID_STEPS = 4  # >= max(4, 2 * num_TCs-per-chip) for pipelining + megacore


def _scale_kernel(x_ref, p_ref, o_ref):
    # Elementwise multiply; the (1, TILE_W) param row broadcasts over the
    # (TILE_R, TILE_W) x tile along sublanes.  Pure VPU work, mem-bound.
    o_ref[...] = x_ref[...] * p_ref[...]


def _tile_budget():
    """Per-TPU-generation (tile_bytes, vmem_limit_bytes or None)."""
    kind = ""
    try:
        kind = jax.devices()[0].device_kind.lower()
    except Exception:  # pragma: no cover - defensive only
        pass
    if "v7" in kind:
        # 3.2 TB/s HBM: amortize the ~0.35us/step overhead with bigger tiles.
        # footprint ~ 4 * tile (double-buffered in + out) stays << 48 MiB.
        return 8 << 20, 48 << 20
    if "v6" in kind:
        return 4 << 20, None  # 32 MiB default scoped VMEM is plenty
    # v5e (16 MiB default scoped VMEM) and unknown chips: stay conservative.
    return 3 << 20, None


def _scale_2d(x2d, p_row, *, donate_x, max_tile_bytes, vmem_limit_bytes=None):
    rows, width = x2d.shape
    itemsize = jnp.dtype(x2d.dtype).itemsize

    # ---- width (lane) tiling -------------------------------------------
    if width % _LANE == 0:
        # Multiple-of-128 column tile sized so ~8 rows fit the byte budget.
        max_cols = max(_LANE, (max_tile_bytes // (_SUBLANE * itemsize)) // _LANE * _LANE)
        tile_w = min(width, max_cols)
    else:
        # Full unpadded width (allowed when block dim == array dim); the
        # compiler emits masked stores for the ragged lanes.
        # TODO(synk): extremely wide non-128-aligned hidden could still exceed
        # VMEM at 8 rows; not reachable for this module's shapes.
        tile_w = width

    # ---- row (sublane) tiling -------------------------------------------
    row_bytes = tile_w * itemsize
    tile_rows = min(rows, max(_SUBLANE, (max_tile_bytes // row_bytes) // _SUBLANE * _SUBLANE))

    # Grid-length floor: make sure several tiles are in flight so DMA overlaps
    # compute and the parallel axes can be split across TensorCores.
    steps = pl.cdiv(rows, tile_rows) * pl.cdiv(width, tile_w)
    if steps < _MIN_GRID_STEPS and rows >= _SUBLANE * _MIN_GRID_STEPS:
        tile_rows = min(tile_rows,
                        max(_SUBLANE, (rows // _MIN_GRID_STEPS) // _SUBLANE * _SUBLANE))

    grid = (pl.cdiv(rows, tile_rows), pl.cdiv(width, tile_w))

    cost = pl.CostEstimate(
        flops=rows * width,
        transcendentals=0,
        bytes_accessed=(2 * rows * width + width) * itemsize,
    )

    cp_kwargs = dict(dimension_semantics=("parallel", "parallel"))
    if vmem_limit_bytes is not None:
        cp_kwargs["vmem_limit_bytes"] = vmem_limit_bytes

    return pl.pallas_call(
        _scale_kernel,
        out_shape=jax.ShapeDtypeStruct((rows, width), x2d.dtype),
        grid_spec=pltpu.PrefetchScalarGridSpec(
            num_scalar_prefetch=0,
            grid=grid,
            in_specs=[
                # x: tiled over rows and (when 128-aligned) over width.
                pl.BlockSpec((tile_rows, tile_w), lambda i, j: (i, j)),
                # param row: constant along the row axis, tiled along width.
                pl.BlockSpec((1, tile_w), lambda i, j: (0, j)),
            ],
            out_specs=pl.BlockSpec((tile_rows, tile_w), lambda i, j: (i, j)),
        ),
        compiler_params=pltpu.CompilerParams(**cp_kwargs),
        cost_estimate=cost,
        input_output_aliases=({0: 0} if donate_x else {}),
    )(x2d, p_row)


def elementwise_scale(x, param, *, donate_x=False, max_tile_bytes=None):
    """Compute x * param (param broadcast along the last axis) via Pallas.

    x:     (..., hidden)
    param: (hidden,)
    donate_x: alias x to the output. Only a real in-place update if the caller
              actually donates x (e.g. jit donate_argnums); otherwise XLA
              inserts a copy (still correct).
    """
    (hidden,) = param.shape
    assert x.shape[-1] == hidden, "last dim of x must equal param size"
    orig_shape = x.shape
    param = param.astype(x.dtype)

    x2d = x.reshape(-1, hidden)
    batch = x2d.shape[0]

    tile_bytes, vmem_limit = _tile_budget()
    if max_tile_bytes is not None:
        tile_bytes = max_tile_bytes

    if hidden % _LANE == 0:
        # Already lane-aligned: tile over rows (and width if very wide).
        y2d = _scale_2d(x2d, param.reshape(1, hidden), donate_x=donate_x,
                        max_tile_bytes=tile_bytes, vmem_limit_bytes=vmem_limit)
        return y2d.reshape(orig_shape)

    # gcd repack: fold `rep` consecutive rows into one lane-dense row whose
    # width hidden*rep is a multiple of 128.  Pure reshape on contiguous data
    # (layout plumbing only, no extra HBM traffic); param is tiled rep times.
    g = math.gcd(hidden, _LANE)
    rep = _LANE // g
    if rep > 1 and batch % rep == 0:
        wide = hidden * rep
        x_view = x2d.reshape(batch // rep, wide)
        p_row = jnp.tile(param, rep).reshape(1, wide)
        y_view = _scale_2d(x_view, p_row, donate_x=donate_x,
                           max_tile_bytes=tile_bytes, vmem_limit_bytes=vmem_limit)
        return y_view.reshape(orig_shape)

    # Non-128-aligned hidden that cannot be repacked: keep the FULL unpadded
    # hidden as the last block dim and accept masked partial stores instead of
    # the old pad + slice-back round trip (which tripled HBM traffic).
    y2d = _scale_2d(x2d, param.reshape(1, hidden), donate_x=donate_x,
                    max_tile_bytes=tile_bytes, vmem_limit_bytes=vmem_limit)
    return y2d.reshape(orig_shape)


if __name__ == "__main__":
    key = jax.random.PRNGKey(0)
    k_param, k_x, k_p2, k_x2, k_p3, k_x3, k_p4, k_x4 = jax.random.split(key, 8)

    # --- Small case matching the module: input_size=32, batch=8 ------------
    hidden = 32
    batch = 8
    param = jax.random.normal(k_param, (hidden,), dtype=jnp.float32)
    x = jax.random.normal(k_x, (batch, hidden), dtype=jnp.float32)

    y = elementwise_scale(x, param)
    jax.block_until_ready(y)
    assert y.shape == (batch, hidden)
    assert jnp.allclose(y, x * param, atol=1e-6, rtol=1e-6)

    # --- Lane-aligned case exercising the multi-step row-tiled grid --------
    hidden2, batch2 = 256, 72  # not a multiple of the tile -> ragged last block
    param2 = jax.random.normal(k_p2, (hidden2,), dtype=jnp.float32)
    x2 = jax.random.normal(k_x2, (batch2, hidden2), dtype=jnp.float32)
    y2 = elementwise_scale(x2, param2, max_tile_bytes=32 * 1024)
    jax.block_until_ready(y2)
    assert jnp.allclose(y2, x2 * param2, atol=1e-6, rtol=1e-6)

    # --- gcd-repack case: hidden=96 (g=32, rep=4), batch divisible by rep --
    hidden3, batch3 = 96, 8
    param3 = jax.random.normal(k_p3, (hidden3,), dtype=jnp.float32)
    x3 = jax.random.normal(k_x3, (batch3, hidden3), dtype=jnp.float32)
    y3 = elementwise_scale(x3, param3)
    jax.block_until_ready(y3)
    assert jnp.allclose(y3, x3 * param3, atol=1e-6, rtol=1e-6)

    # --- Masked-store fallback: hidden=40 (rep=16, batch % rep != 0) -------
    hidden4, batch4 = 40, 8
    param4 = jax.random.normal(k_p4, (hidden4,), dtype=jnp.float32)
    x4 = jax.random.normal(k_x4, (batch4, hidden4), dtype=jnp.float32)
    y4 = elementwise_scale(x4, param4)
    jax.block_until_ready(y4)
    assert jnp.allclose(y4, x4 * param4, atol=1e-6, rtol=1e-6)

    print("KERNEL_OK")
</pallas_src>

<mosaic_0001>
module attributes {stable_mosaic.version = 11 : i64} {
  func.func @_scale_kernel(%arg0: i32, %arg1: i32, %arg2: memref<2x128xf32, #tpu.memory_space<vmem>>, %arg3: memref<1x128xf32, #tpu.memory_space<vmem>>, %arg4: memref<2x128xf32, #tpu.memory_space<vmem>>) attributes {dimension_semantics = [#tpu.dimension_semantics<parallel>, #tpu.dimension_semantics<parallel>], iteration_bounds = array<i64: 1, 1>, scalar_prefetch = 0 : i64, scratch_operands = 0 : i64, tpu.core_type = #tpu.core_type<tc>, window_params = [{transform_indices = @transform_0, window_bounds = array<i64: 2, 128>}, {transform_indices = @transform_1, window_bounds = array<i64: 1, 128>}, {transform_indices = @transform_2, window_bounds = array<i64: 2, 128>}]} {
    %c0 = arith.constant 0 : index
    %c0_0 = arith.constant 0 : index
    %0 = vector.load %arg2[%c0, %c0_0] : memref<2x128xf32, #tpu.memory_space<vmem>>, vector<2x128xf32>
    %c0_1 = arith.constant 0 : index
    %c0_2 = arith.constant 0 : index
    %1 = vector.load %arg3[%c0_1, %c0_2] : memref<1x128xf32, #tpu.memory_space<vmem>>, vector<1x128xf32>
    %2 = vector.broadcast %1 : vector<1x128xf32> to vector<2x128xf32>
    %3 = arith.mulf %0, %2 : vector<2x128xf32>
    %c0_3 = arith.constant 0 : index
    %c0_4 = arith.constant 0 : index
    %4 = vector.load %arg4[%c0_3, %c0_4] : memref<2x128xf32, #tpu.memory_space<vmem>>, vector<2x128xf32>
    tpu.vector_store %arg4[%c0_3, %c0_4], %3 {strides = array<i32>} : memref<2x128xf32, #tpu.memory_space<vmem>>, vector<2x128xf32>,
    return
  }
  func.func @transform_0(%arg0: i32, %arg1: i32) -> (i32, i32) {
    %c0_i32 = arith.constant 0 : i32
    return %arg0, %arg1 : i32, i32
  }
  func.func @transform_1(%arg0: i32, %arg1: i32) -> (i32, i32) {
    %c0_i32 = arith.constant 0 : i32
    %c0_i32_0 = arith.constant 0 : i32
    return %c0_i32, %arg1 : i32, i32
  }
  func.func @transform_2(%arg0: i32, %arg1: i32) -> (i32, i32) {
    %c0_i32 = arith.constant 0 : i32
    return %arg0, %arg1 : i32, i32
  }
}

</mosaic_0001>

<bundles_post_ra>
// kernel: tpu_custom_call.1
= control target key start
LH: loop header
LB: loop body
LE: loop exit
PB: predicated region body
PF: predicated region fallthrough
CT: control target
= control target key end

     0   :  { %7 = vsyncpa [#allocation3], 0  ;;  %s122_s0 = inlined_call_operand.hbm [shape: f32[2,128], index: 0, kind: input, shape index: {}]   ;;  %s123_s1 = inlined_call_operand.vmem [shape: f32[1,128], index: 1, kind: input, shape index: {}]   ;;  %s124_s2 = inlined_call_operand.hbm [shape: f32[2,128], index: 2, kind: output, shape index: {}]  }
   0x1   :  { %8 = vsyncpa [#allocation4], 0  ;;  %s96_s9 = smov [#allocation2]  }
   0x2   :  { %s15_s10 = sshll.u32 %s96_s9, 4  ;;  %s16_s10 = int_to_ptr.vmem [resolvable:$true] %s15_s10 }
   0x3   :  { %s60_s11 = scalar_lea.vmem %s16_s10, 32  ;;  %p65_p1 = scmp.lt.s32.totalorder %s16_s10, %s16_s10 }
   0x4   :  { %p61_p0 = scmp.ne.s32.totalorder %s16_s10, %s60_s11  ;;  %p66_p2 = scmp.lt.s32.totalorder %s60_s11, %s60_s11 }
   0x6   :  { %p67_p3 = por %p66_p2, %p65_p1 }
   0x8   :  { %p68_p4 = pnand %p67_p3, %p61_p0 }
   0xa   :  { %71 = shalt.err (!%p68_p4)
}
   0xb   :  { %18 = dma.hbm_to_vmem [thread:$0]  %s122_s0, 32, %s16_s10, [#allocation3]  }
   0xc   :  { %92 = dma.done.wait [#allocation3], 32  }
   0xd   :  { %93 = vsyncadd [#allocation3], 4294967264  ;;  %s97_s14 = smov [#allocation5]   ;;  %v24_v0 = vld [vmem:[#allocation2] sm:$0x3] }
   0xe   :  { %s40_s15 = sshll.u32 %s97_s14, 4  ;;  %v49_v1 = vld [vmem:[%s123_s1] ss:$0 sm:$0xff]  ;;  %s41_s15 = int_to_ptr.vmem [resolvable:$true] %s40_s15 }
   0xf   :  { %v32_v2 = vmul.f32 %v49_v1, %v24_v0  ;;  %s72_s18 = scalar_lea.vmem %s41_s15, 32  ;;  %p77_p6 = scmp.lt.s32.totalorder %s41_s15, %s41_s15 }
  0x10   :  { %p73_p5 = scmp.ne.s32.totalorder %s41_s15, %s72_s18  ;;  %p78_p7 = scmp.lt.s32.totalorder %s72_s18, %s72_s18 }
  0x11   :  { %33 = vst [vmem:[#allocation5] sm:$0x3] %v32_v2 }
  0x12   :  { %p79_p8 = por %p78_p7, %p77_p6 }
  0x14   :  { %p80_p9 = pnand %p79_p8, %p73_p5 }
  0x16   :  { %83 = shalt.err (!%p80_p9)
}
  0x17   :  { %43 = dma.vmem_to_hbm [thread:$0]  %s41_s15, 32, %s124_s2, [#allocation4]  }
  0x18   :  { %94 = dma.done.wait [#allocation4], 32  }
  0x19   :  { %95 = vsyncadd [#allocation4], 4294967264 }
  0x1a   :  { %47 = vsyncpa [#allocation3], 1 }
  0x1b   :  { %48 = vsyncpa [#allocation4], 1 }

</bundles_post_ra>
